<compile_context>
chip_gen: v6e
topology: v6e:2x2x1
jax: 0.10.0
libtpu: 0.0.40
codegen_flags: <defaults>
</compile_context>

<pallas_src>
import jax
import jax.numpy as jnp
from jax.experimental import pallas as pl
from jax.experimental.pallas import tpu as pltpu


# ---------------------------------------------------------------------------
# Weight folding helpers (run wrapper-side, once per traced call; all tiny).
# ---------------------------------------------------------------------------
def _band_conv_matrices(w_hwio, w_pix):
    """3x3 conv (padding=1) as 3 banded matmuls on row-flat rows.

    w_hwio: (3, 3, Cin, Cout).  Returns (3, w_pix*Cin, w_pix*Cout) so that
      out_row(p) = sum_ky  in_row(p + ky - 1) @ mats[ky]
    where rows are (w_pix*C)-flat and out-of-range columns are zero (the band
    structure implements the horizontal padding).
    """
    mats = []
    for ky in range(3):
        m = jnp.zeros((w_pix * w_hwio.shape[2], w_pix * w_hwio.shape[3]),
                      jnp.float32)
        for dx in (-1, 0, 1):
            shift = jnp.eye(w_pix, k=-dx, dtype=jnp.float32)      # [q+dx, q] = 1
            m = m + jnp.kron(shift, w_hwio[ky, dx + 1])
        mats.append(m)
    return jnp.stack(mats)


def _upsample_matrices(wt, w_in):
    """ConvTranspose2d(k=2, s=2) as row-flat matmuls.

    wt: (Cin, Cout, 2, 2) PyTorch layout.  Returns A: (2, w_in*Cin, 2*w_in*Cout)
    where A[a] maps an x1 row to the column-interleaved upsampled row of
    vertical parity a (row parities are scattered by the E matrices below).
    """
    mats = []
    for a in range(2):
        m = jnp.zeros((w_in * wt.shape[0], 2 * w_in * wt.shape[1]), jnp.float32)
        for b in range(2):
            scat = jnp.kron(jnp.eye(w_in, dtype=jnp.float32),
                            jnp.eye(1, 2, k=b, dtype=jnp.float32))  # [w, 2w+b]=1
            m = m + jnp.kron(scat, wt[:, :, a, b])
        mats.append(m)
    return jnp.stack(mats)


# ---------------------------------------------------------------------------
# Up.forward — single fused Pallas kernel, grid over batch.
# ---------------------------------------------------------------------------
def up_forward(params, x1_nchw, x2_nchw):
    N, C, H, W = x1_nchw.shape
    _, C2, Hout, Wout = x2_nchw.shape
    wt = params["up_w"]                       # (C, Cup, 2, 2)
    Cup = wt.shape[1]
    M = params["conv1_w"].shape[0]            # out_ch

    diffY = Hout - 2 * H
    diffX = Wout - 2 * W
    row_off = 1 + diffY // 2                  # +1 = conv padding row
    lane_off = (diffX // 2) * Cup
    up_rows = 2 * H
    up_lanes = 2 * W * Cup

    # --- layout plumbing (tiny): NCHW -> row-flat (N, Himg, Wimg*C) ---
    x1_rf = jnp.transpose(x1_nchw, (0, 2, 3, 1)).reshape(N, H, W * C)
    x2_rf = jnp.transpose(x2_nchw, (0, 2, 3, 1)).reshape(N, Hout, Wout * C2)

    # --- fold weights into lane-dense matmul operands ---
    A = _upsample_matrices(wt, W)                                   # (2, W*C, 2W*Cup)
    E = jnp.stack([jnp.kron(jnp.eye(H, dtype=jnp.float32),
                            jnp.eye(2, 1, k=-a, dtype=jnp.float32))
                   for a in range(2)])                              # (2, 2H, H)
    w1 = jnp.transpose(params["conv1_w"], (2, 3, 1, 0))             # (3,3,C2+Cup,M)
    B1x2 = _band_conv_matrices(w1[:, :, :C2, :], Wout)              # x2 channels
    B1y = _band_conv_matrices(w1[:, :, C2:, :], Wout)               # upsampled channels
    w2 = jnp.transpose(params["conv2_w"], (2, 3, 1, 0))
    B2 = _band_conv_matrices(w2, Wout)
    bup = jnp.tile(params["up_b"], 2 * W)[None, :]                  # (1, 2W*Cup)
    b1 = jnp.tile(params["conv1_b"], Wout)[None, :]                 # (1, Wout*M)
    b2 = jnp.tile(params["conv2_b"], Wout)[None, :]

    def kernel(x1_ref, x2_ref, a_ref, e_ref, b1x2_ref, b1y_ref, b2w_ref,
               bup_ref, b1_ref, b2_ref, o_ref, ys, x2s, h1s):
        # --- ConvTranspose2d(k=2,s=2): channel mix + constant row scatter ---
        x1 = x1_ref[0]                                              # (H, W*C)
        y_even = jnp.dot(x1, a_ref[0], preferred_element_type=jnp.float32)
        y_odd = jnp.dot(x1, a_ref[1], preferred_element_type=jnp.float32)
        up = (jnp.dot(e_ref[0], y_even, preferred_element_type=jnp.float32)
              + jnp.dot(e_ref[1], y_odd, preferred_element_type=jnp.float32)
              + bup_ref[...])                                       # (2H, 2W*Cup)

        # --- F.pad(diffY/diffX) + conv padding=1, realized in VMEM scratch ---
        ys[...] = jnp.zeros_like(ys)
        x2s[...] = jnp.zeros_like(x2s)
        ys[row_off:row_off + up_rows, lane_off:lane_off + up_lanes] = up
        x2s[1:1 + Hout, :] = x2_ref[0]

        # --- conv1 + ReLU; concat([x2, up]) folded via split weights ---
        acc1 = jnp.zeros((Hout, Wout * M), jnp.float32)
        for ky in range(3):
            acc1 = acc1 + jnp.dot(x2s[ky:ky + Hout, :], b1x2_ref[ky],
                                  preferred_element_type=jnp.float32)
            acc1 = acc1 + jnp.dot(ys[ky:ky + Hout, :], b1y_ref[ky],
                                  preferred_element_type=jnp.float32)
        h1 = jnp.maximum(acc1 + b1_ref[...], 0.0)

        # --- conv2 + ReLU; conv1 output never leaves VMEM ---
        h1s[...] = jnp.zeros_like(h1s)
        h1s[1:1 + Hout, :] = h1
        acc2 = jnp.zeros((Hout, Wout * M), jnp.float32)
        for ky in range(3):
            acc2 = acc2 + jnp.dot(h1s[ky:ky + Hout, :], b2w_ref[ky],
                                  preferred_element_type=jnp.float32)
        o_ref[...] = jnp.maximum(acc2 + b2_ref[...], 0.0).reshape(1, Hout, Wout * M)

    out_rf = pl.pallas_call(
        kernel,
        grid=(N,),
        out_shape=jax.ShapeDtypeStruct((N, Hout, Wout * M), jnp.float32),
        in_specs=[
            pl.BlockSpec((1, H, W * C), lambda n: (n, 0, 0)),
            pl.BlockSpec((1, Hout, Wout * C2), lambda n: (n, 0, 0)),
            pl.BlockSpec((2, W * C, 2 * W * Cup), lambda n: (0, 0, 0)),
            pl.BlockSpec((2, 2 * H, H), lambda n: (0, 0, 0)),
            pl.BlockSpec((3, Wout * C2, Wout * M), lambda n: (0, 0, 0)),
            pl.BlockSpec((3, Wout * Cup, Wout * M), lambda n: (0, 0, 0)),
            pl.BlockSpec((3, Wout * M, Wout * M), lambda n: (0, 0, 0)),
            pl.BlockSpec((1, 2 * W * Cup), lambda n: (0, 0)),
            pl.BlockSpec((1, Wout * M), lambda n: (0, 0)),
            pl.BlockSpec((1, Wout * M), lambda n: (0, 0)),
        ],
        out_specs=pl.BlockSpec((1, Hout, Wout * M), lambda n: (n, 0, 0)),
        scratch_shapes=[
            pltpu.VMEM((Hout + 2, Wout * Cup), jnp.float32),   # padded upsampled y
            pltpu.VMEM((Hout + 2, Wout * C2), jnp.float32),    # padded x2
            pltpu.VMEM((Hout + 2, Wout * M), jnp.float32),     # padded conv1 out
        ],
        compiler_params=pltpu.CompilerParams(
            dimension_semantics=("parallel",)),   # batch images across TCs (v7x)
    )(x1_rf, x2_rf, A, E, B1x2, B1y, B2, bup, b1, b2)

    # TODO(synk): for real UNet sizes, tile Hout into row blocks with a 1-row
    # halo (grid (N, Hout//th)) and tile Wout so the banded matrices stay small
    # and the per-step working set respects v7x's 64 MiB VMEM.
    return jnp.transpose(out_rf.reshape(N, Hout, Wout, M), (0, 3, 1, 2))  # NCHW


# ---------------------------------------------------------------------------
# Pure-JAX reference (correctness check only; high precision).
# ---------------------------------------------------------------------------
def up_reference(params, x1, x2):
    wt, bt = params["up_w"], params["up_b"]
    t = jnp.einsum("nchw,cokl->nohkwl", x1, wt,
                   precision=jax.lax.Precision.HIGHEST)
    N, Co, H, _, W, _ = t.shape
    y = t.reshape(N, Co, 2 * H, 2 * W) + bt[None, :, None, None]
    diffY = x2.shape[2] - y.shape[2]
    diffX = x2.shape[3] - y.shape[3]
    y = jnp.pad(y, ((0, 0), (0, 0),
                    (diffY // 2, diffY - diffY // 2),
                    (diffX // 2, diffX - diffX // 2)))
    x = jnp.concatenate([x2, y], axis=1)

    def conv_relu(x, w, b):
        out = jax.lax.conv_general_dilated(
            x, w, (1, 1), "SAME",
            dimension_numbers=("NCHW", "OIHW", "NCHW"),
            precision=jax.lax.Precision.HIGHEST,
        )
        return jnp.maximum(out + b[None, :, None, None], 0.0)

    x = conv_relu(x, params["conv1_w"], params["conv1_b"])
    x = conv_relu(x, params["conv2_w"], params["conv2_b"])
    return x


if __name__ == "__main__":
    # Up(in_ch=8, out_ch=4, up_mode=None)  -- ConvTranspose2d path
    in_ch, out_ch = 8, 4
    N, H, W = 2, 8, 8  # x1 spatial; x2 is 2x larger (standard UNet skip)

    key = jax.random.PRNGKey(0)
    k = jax.random.split(key, 8)
    params = {
        # ConvTranspose2d(in_ch//2, in_ch//2, 2, 2): weight (Cin, Cout, 2, 2)
        "up_w": 0.1 * jax.random.normal(k[0], (in_ch // 2, in_ch // 2, 2, 2), jnp.float32),
        "up_b": 0.1 * jax.random.normal(k[1], (in_ch // 2,), jnp.float32),
        # Conv2d(in_ch, out_ch, 3, padding=1): weight (Cout, Cin, 3, 3)
        "conv1_w": 0.1 * jax.random.normal(k[2], (out_ch, in_ch, 3, 3), jnp.float32),
        "conv1_b": 0.1 * jax.random.normal(k[3], (out_ch,), jnp.float32),
        # Conv2d(out_ch, out_ch, 3, padding=1)
        "conv2_w": 0.1 * jax.random.normal(k[4], (out_ch, out_ch, 3, 3), jnp.float32),
        "conv2_b": 0.1 * jax.random.normal(k[5], (out_ch,), jnp.float32),
    }

    x1 = jax.random.normal(k[6], (N, in_ch // 2, H, W), jnp.float32)        # NCHW
    x2 = jax.random.normal(k[7], (N, in_ch // 2, 2 * H, 2 * W), jnp.float32)

    out = jax.jit(up_forward)(params, x1, x2)
    out = jax.block_until_ready(out)

    ref = up_reference(params, x1, x2)
    assert out.shape == (N, out_ch, 2 * H, 2 * W), out.shape
    # Default (non-HIGHEST) MXU precision in the kernel -> loose tolerance.
    assert jnp.allclose(out, ref, atol=5e-2, rtol=5e-2), \
        float(jnp.max(jnp.abs(out - ref)))

    print("KERNEL_OK")
</pallas_src>

<mosaic_0001>
module attributes {stable_mosaic.version = 11 : i64} {
  func.func @kernel(%arg0: i32, %arg1: memref<1x8x32xf32, #tpu.memory_space<vmem>>, %arg2: memref<1x16x64xf32, #tpu.memory_space<vmem>>, %arg3: memref<2x32x64xf32, #tpu.memory_space<vmem>>, %arg4: memref<2x16x8xf32, #tpu.memory_space<vmem>>, %arg5: memref<3x64x64xf32, #tpu.memory_space<vmem>>, %arg6: memref<3x64x64xf32, #tpu.memory_space<vmem>>, %arg7: memref<3x64x64xf32, #tpu.memory_space<vmem>>, %arg8: memref<1x64xf32, #tpu.memory_space<vmem>>, %arg9: memref<1x64xf32, #tpu.memory_space<vmem>>, %arg10: memref<1x64xf32, #tpu.memory_space<vmem>>, %arg11: memref<1x16x64xf32, #tpu.memory_space<vmem>>, %arg12: memref<18x64xf32, #tpu.memory_space<vmem>>, %arg13: memref<18x64xf32, #tpu.memory_space<vmem>>, %arg14: memref<18x64xf32, #tpu.memory_space<vmem>>) attributes {dimension_semantics = [#tpu.dimension_semantics<parallel>], iteration_bounds = array<i64: 2>, scalar_prefetch = 0 : i64, scratch_operands = 3 : i64, tpu.core_type = #tpu.core_type<tc>, window_params = [{transform_indices = @transform_0, window_bounds = array<i64: 1, 8, 32>}, {transform_indices = @transform_1, window_bounds = array<i64: 1, 16, 64>}, {pipeline_mode = #tpu.pipeline_mode<synchronous>, transform_indices = @transform_2, window_bounds = array<i64: 2, 32, 64>}, {pipeline_mode = #tpu.pipeline_mode<synchronous>, transform_indices = @transform_3, window_bounds = array<i64: 2, 16, 8>}, {pipeline_mode = #tpu.pipeline_mode<synchronous>, transform_indices = @transform_4, window_bounds = array<i64: 3, 64, 64>}, {pipeline_mode = #tpu.pipeline_mode<synchronous>, transform_indices = @transform_5, window_bounds = array<i64: 3, 64, 64>}, {pipeline_mode = #tpu.pipeline_mode<synchronous>, transform_indices = @transform_6, window_bounds = array<i64: 3, 64, 64>}, {pipeline_mode = #tpu.pipeline_mode<synchronous>, transform_indices = @transform_7, window_bounds = array<i64: 1, 64>}, {pipeline_mode = #tpu.pipeline_mode<synchronous>, transform_indices = @transform_8, window_bounds = array<i64: 1, 64>}, {pipeline_mode = #tpu.pipeline_mode<synchronous>, transform_indices = @transform_9, window_bounds = array<i64: 1, 64>}, {transform_indices = @transform_10, window_bounds = array<i64: 1, 16, 64>}]} {
    %c0 = arith.constant 0 : index
    %c0_0 = arith.constant 0 : index
    %c0_1 = arith.constant 0 : index
    %0 = vector.load %arg1[%c0, %c0_0, %c0_1] : memref<1x8x32xf32, #tpu.memory_space<vmem>>, vector<1x8x32xf32>
    %1 = vector.shape_cast %0 : vector<1x8x32xf32> to vector<8x32xf32>
    %c0_2 = arith.constant 0 : index
    %c0_3 = arith.constant 0 : index
    %c0_4 = arith.constant 0 : index
    %2 = vector.load %arg3[%c0_2, %c0_3, %c0_4] : memref<2x32x64xf32, #tpu.memory_space<vmem>>, vector<1x32x64xf32>
    %3 = vector.shape_cast %2 : vector<1x32x64xf32> to vector<32x64xf32>
    %cst = arith.constant dense<0.000000e+00> : vector<8x64xf32>
    %4 = tpu.matmul %1, %3, %cst {dimension_numbers = #tpu.dot_dimension_numbers<[1], [0], [0], [1], [0, 0, 1, 1], [], []>} : vector<8x32xf32>, vector<32x64xf32>, vector<8x64xf32> -> vector<8x64xf32>
    %c1 = arith.constant 1 : index
    %c0_5 = arith.constant 0 : index
    %c0_6 = arith.constant 0 : index
    %5 = vector.load %arg3[%c1, %c0_5, %c0_6] : memref<2x32x64xf32, #tpu.memory_space<vmem>>, vector<1x32x64xf32>
    %6 = vector.shape_cast %5 : vector<1x32x64xf32> to vector<32x64xf32>
    %cst_7 = arith.constant dense<0.000000e+00> : vector<8x64xf32>
    %7 = tpu.matmul %1, %6, %cst_7 {dimension_numbers = #tpu.dot_dimension_numbers<[1], [0], [0], [1], [0, 0, 1, 1], [], []>} : vector<8x32xf32>, vector<32x64xf32>, vector<8x64xf32> -> vector<8x64xf32>
    %c0_8 = arith.constant 0 : index
    %c0_9 = arith.constant 0 : index
    %c0_10 = arith.constant 0 : index
    %8 = vector.load %arg4[%c0_8, %c0_9, %c0_10] : memref<2x16x8xf32, #tpu.memory_space<vmem>>, vector<1x16x8xf32>
    %9 = vector.shape_cast %8 : vector<1x16x8xf32> to vector<16x8xf32>
    %cst_11 = arith.constant dense<0.000000e+00> : vector<16x64xf32>
    %10 = tpu.matmul %9, %4, %cst_11 {dimension_numbers = #tpu.dot_dimension_numbers<[1], [0], [0], [1], [0, 0, 1, 1], [], []>} : vector<16x8xf32>, vector<8x64xf32>, vector<16x64xf32> -> vector<16x64xf32>
    %c1_12 = arith.constant 1 : index
    %c0_13 = arith.constant 0 : index
    %c0_14 = arith.constant 0 : index
    %11 = vector.load %arg4[%c1_12, %c0_13, %c0_14] : memref<2x16x8xf32, #tpu.memory_space<vmem>>, vector<1x16x8xf32>
    %12 = vector.shape_cast %11 : vector<1x16x8xf32> to vector<16x8xf32>
    %cst_15 = arith.constant dense<0.000000e+00> : vector<16x64xf32>
    %13 = tpu.matmul %12, %7, %cst_15 {dimension_numbers = #tpu.dot_dimension_numbers<[1], [0], [0], [1], [0, 0, 1, 1], [], []>} : vector<16x8xf32>, vector<8x64xf32>, vector<16x64xf32> -> vector<16x64xf32>
    %14 = arith.addf %10, %13 : vector<16x64xf32>
    %c0_16 = arith.constant 0 : index
    %c0_17 = arith.constant 0 : index
    %15 = vector.load %arg8[%c0_16, %c0_17] : memref<1x64xf32, #tpu.memory_space<vmem>>, vector<1x64xf32>
    %16 = vector.broadcast %15 : vector<1x64xf32> to vector<16x64xf32>
    %17 = arith.addf %14, %16 : vector<16x64xf32>
    %cst_18 = arith.constant 0.000000e+00 : f32
    %18 = vector.broadcast %cst_18 : f32 to vector<18x64xf32>
    %c0_19 = arith.constant 0 : index
    %c0_20 = arith.constant 0 : index
    %19 = vector.load %arg12[%c0_19, %c0_20] : memref<18x64xf32, #tpu.memory_space<vmem>>, vector<18x64xf32>
    tpu.vector_store %arg12[%c0_19, %c0_20], %18 {strides = array<i32>} : memref<18x64xf32, #tpu.memory_space<vmem>>, vector<18x64xf32>,
    %cst_21 = arith.constant 0.000000e+00 : f32
    %20 = vector.broadcast %cst_21 : f32 to vector<18x64xf32>
    %c0_22 = arith.constant 0 : index
    %c0_23 = arith.constant 0 : index
    %21 = vector.load %arg13[%c0_22, %c0_23] : memref<18x64xf32, #tpu.memory_space<vmem>>, vector<18x64xf32>
    tpu.vector_store %arg13[%c0_22, %c0_23], %20 {strides = array<i32>} : memref<18x64xf32, #tpu.memory_space<vmem>>, vector<18x64xf32>,
    %c1_24 = arith.constant 1 : index
    %c0_25 = arith.constant 0 : index
    %22 = vector.load %arg12[%c1_24, %c0_25] : memref<18x64xf32, #tpu.memory_space<vmem>>, vector<16x64xf32>
    tpu.vector_store %arg12[%c1_24, %c0_25], %17 {strides = array<i32>} : memref<18x64xf32, #tpu.memory_space<vmem>>, vector<16x64xf32>,
    %c0_26 = arith.constant 0 : index
    %c0_27 = arith.constant 0 : index
    %c0_28 = arith.constant 0 : index
    %23 = vector.load %arg2[%c0_26, %c0_27, %c0_28] : memref<1x16x64xf32, #tpu.memory_space<vmem>>, vector<1x16x64xf32>
    %24 = vector.shape_cast %23 : vector<1x16x64xf32> to vector<16x64xf32>
    %c1_29 = arith.constant 1 : index
    %c0_30 = arith.constant 0 : index
    %25 = vector.load %arg13[%c1_29, %c0_30] : memref<18x64xf32, #tpu.memory_space<vmem>>, vector<16x64xf32>
    tpu.vector_store %arg13[%c1_29, %c0_30], %24 {strides = array<i32>} : memref<18x64xf32, #tpu.memory_space<vmem>>, vector<16x64xf32>,
    %cst_31 = arith.constant 0.000000e+00 : f32
    %26 = vector.broadcast %cst_31 : f32 to vector<16x64xf32>
    %c0_32 = arith.constant 0 : index
    %c0_33 = arith.constant 0 : index
    %27 = vector.load %arg13[%c0_32, %c0_33] : memref<18x64xf32, #tpu.memory_space<vmem>>, vector<16x64xf32>
    %c0_34 = arith.constant 0 : index
    %c0_35 = arith.constant 0 : index
    %c0_36 = arith.constant 0 : index
    %28 = vector.load %arg5[%c0_34, %c0_35, %c0_36] : memref<3x64x64xf32, #tpu.memory_space<vmem>>, vector<1x64x64xf32>
    %29 = vector.shape_cast %28 : vector<1x64x64xf32> to vector<64x64xf32>
    %cst_37 = arith.constant dense<0.000000e+00> : vector<16x64xf32>
    %30 = tpu.matmul %27, %29, %cst_37 {dimension_numbers = #tpu.dot_dimension_numbers<[1], [0], [0], [1], [0, 0, 1, 1], [], []>} : vector<16x64xf32>, vector<64x64xf32>, vector<16x64xf32> -> vector<16x64xf32>
    %31 = arith.addf %26, %30 : vector<16x64xf32>
    %c0_38 = arith.constant 0 : index
    %c0_39 = arith.constant 0 : index
    %32 = vector.load %arg12[%c0_38, %c0_39] : memref<18x64xf32, #tpu.memory_space<vmem>>, vector<16x64xf32>
    %c0_40 = arith.constant 0 : index
    %c0_41 = arith.constant 0 : index
    %c0_42 = arith.constant 0 : index
    %33 = vector.load %arg6[%c0_40, %c0_41, %c0_42] : memref<3x64x64xf32, #tpu.memory_space<vmem>>, vector<1x64x64xf32>
    %34 = vector.shape_cast %33 : vector<1x64x64xf32> to vector<64x64xf32>
    %cst_43 = arith.constant dense<0.000000e+00> : vector<16x64xf32>
    %35 = tpu.matmul %32, %34, %cst_43 {dimension_numbers = #tpu.dot_dimension_numbers<[1], [0], [0], [1], [0, 0, 1, 1], [], []>} : vector<16x64xf32>, vector<64x64xf32>, vector<16x64xf32> -> vector<16x64xf32>
    %36 = arith.addf %31, %35 : vector<16x64xf32>
    %c1_44 = arith.constant 1 : index
    %c0_45 = arith.constant 0 : index
    %37 = vector.load %arg13[%c1_44, %c0_45] : memref<18x64xf32, #tpu.memory_space<vmem>>, vector<16x64xf32>
    %c1_46 = arith.constant 1 : index
    %c0_47 = arith.constant 0 : index
    %c0_48 = arith.constant 0 : index
    %38 = vector.load %arg5[%c1_46, %c0_47, %c0_48] : memref<3x64x64xf32, #tpu.memory_space<vmem>>, vector<1x64x64xf32>
    %39 = vector.shape_cast %38 : vector<1x64x64xf32> to vector<64x64xf32>
    %cst_49 = arith.constant dense<0.000000e+00> : vector<16x64xf32>
    %40 = tpu.matmul %37, %39, %cst_49 {dimension_numbers = #tpu.dot_dimension_numbers<[1], [0], [0], [1], [0, 0, 1, 1], [], []>} : vector<16x64xf32>, vector<64x64xf32>, vector<16x64xf32> -> vector<16x64xf32>
    %41 = arith.addf %36, %40 : vector<16x64xf32>
    %c1_50 = arith.constant 1 : index
    %c0_51 = arith.constant 0 : index
    %42 = vector.load %arg12[%c1_50, %c0_51] : memref<18x64xf32, #tpu.memory_space<vmem>>, vector<16x64xf32>
    %c1_52 = arith.constant 1 : index
    %c0_53 = arith.constant 0 : index
    %c0_54 = arith.constant 0 : index
    %43 = vector.load %arg6[%c1_52, %c0_53, %c0_54] : memref<3x64x64xf32, #tpu.memory_space<vmem>>, vector<1x64x64xf32>
    %44 = vector.shape_cast %43 : vector<1x64x64xf32> to vector<64x64xf32>
    %cst_55 = arith.constant dense<0.000000e+00> : vector<16x64xf32>
    %45 = tpu.matmul %42, %44, %cst_55 {dimension_numbers = #tpu.dot_dimension_numbers<[1], [0], [0], [1], [0, 0, 1, 1], [], []>} : vector<16x64xf32>, vector<64x64xf32>, vector<16x64xf32> -> vector<16x64xf32>
    %46 = arith.addf %41, %45 : vector<16x64xf32>
    %c2 = arith.constant 2 : index
    %c0_56 = arith.constant 0 : index
    %47 = vector.load %arg13[%c2, %c0_56] : memref<18x64xf32, #tpu.memory_space<vmem>>, vector<16x64xf32>
    %c2_57 = arith.constant 2 : index
    %c0_58 = arith.constant 0 : index
    %c0_59 = arith.constant 0 : index
    %48 = vector.load %arg5[%c2_57, %c0_58, %c0_59] : memref<3x64x64xf32, #tpu.memory_space<vmem>>, vector<1x64x64xf32>
    %49 = vector.shape_cast %48 : vector<1x64x64xf32> to vector<64x64xf32>
    %cst_60 = arith.constant dense<0.000000e+00> : vector<16x64xf32>
    %50 = tpu.matmul %47, %49, %cst_60 {dimension_numbers = #tpu.dot_dimension_numbers<[1], [0], [0], [1], [0, 0, 1, 1], [], []>} : vector<16x64xf32>, vector<64x64xf32>, vector<16x64xf32> -> vector<16x64xf32>
    %51 = arith.addf %46, %50 : vector<16x64xf32>
    %c2_61 = arith.constant 2 : index
    %c0_62 = arith.constant 0 : index
    %52 = vector.load %arg12[%c2_61, %c0_62] : memref<18x64xf32, #tpu.memory_space<vmem>>, vector<16x64xf32>
    %c2_63 = arith.constant 2 : index
    %c0_64 = arith.constant 0 : index
    %c0_65 = arith.constant 0 : index
    %53 = vector.load %arg6[%c2_63, %c0_64, %c0_65] : memref<3x64x64xf32, #tpu.memory_space<vmem>>, vector<1x64x64xf32>
    %54 = vector.shape_cast %53 : vector<1x64x64xf32> to vector<64x64xf32>
    %cst_66 = arith.constant dense<0.000000e+00> : vector<16x64xf32>
    %55 = tpu.matmul %52, %54, %cst_66 {dimension_numbers = #tpu.dot_dimension_numbers<[1], [0], [0], [1], [0, 0, 1, 1], [], []>} : vector<16x64xf32>, vector<64x64xf32>, vector<16x64xf32> -> vector<16x64xf32>
    %56 = arith.addf %51, %55 : vector<16x64xf32>
    %c0_67 = arith.constant 0 : index
    %c0_68 = arith.constant 0 : index
    %57 = vector.load %arg9[%c0_67, %c0_68] : memref<1x64xf32, #tpu.memory_space<vmem>>, vector<1x64xf32>
    %58 = vector.broadcast %57 : vector<1x64xf32> to vector<16x64xf32>
    %59 = arith.addf %56, %58 : vector<16x64xf32>
    %cst_69 = arith.constant 0.000000e+00 : f32
    %60 = vector.broadcast %cst_69 : f32 to vector<16x64xf32>
    %61 = arith.maximumf %59, %60 : vector<16x64xf32>
    %cst_70 = arith.constant 0.000000e+00 : f32
    %62 = vector.broadcast %cst_70 : f32 to vector<18x64xf32>
    %c0_71 = arith.constant 0 : index
    %c0_72 = arith.constant 0 : index
    %63 = vector.load %arg14[%c0_71, %c0_72] : memref<18x64xf32, #tpu.memory_space<vmem>>, vector<18x64xf32>
    tpu.vector_store %arg14[%c0_71, %c0_72], %62 {strides = array<i32>} : memref<18x64xf32, #tpu.memory_space<vmem>>, vector<18x64xf32>,
    %c1_73 = arith.constant 1 : index
    %c0_74 = arith.constant 0 : index
    %64 = vector.load %arg14[%c1_73, %c0_74] : memref<18x64xf32, #tpu.memory_space<vmem>>, vector<16x64xf32>
    tpu.vector_store %arg14[%c1_73, %c0_74], %61 {strides = array<i32>} : memref<18x64xf32, #tpu.memory_space<vmem>>, vector<16x64xf32>,
    %cst_75 = arith.constant 0.000000e+00 : f32
    %65 = vector.broadcast %cst_75 : f32 to vector<16x64xf32>
    %c0_76 = arith.constant 0 : index
    %c0_77 = arith.constant 0 : index
    %66 = vector.load %arg14[%c0_76, %c0_77] : memref<18x64xf32, #tpu.memory_space<vmem>>, vector<16x64xf32>
    %c0_78 = arith.constant 0 : index
    %c0_79 = arith.constant 0 : index
    %c0_80 = arith.constant 0 : index
    %67 = vector.load %arg7[%c0_78, %c0_79, %c0_80] : memref<3x64x64xf32, #tpu.memory_space<vmem>>, vector<1x64x64xf32>
    %68 = vector.shape_cast %67 : vector<1x64x64xf32> to vector<64x64xf32>
    %cst_81 = arith.constant dense<0.000000e+00> : vector<16x64xf32>
    %69 = tpu.matmul %66, %68, %cst_81 {dimension_numbers = #tpu.dot_dimension_numbers<[1], [0], [0], [1], [0, 0, 1, 1], [], []>} : vector<16x64xf32>, vector<64x64xf32>, vector<16x64xf32> -> vector<16x64xf32>
    %70 = arith.addf %65, %69 : vector<16x64xf32>
    %c1_82 = arith.constant 1 : index
    %c0_83 = arith.constant 0 : index
    %71 = vector.load %arg14[%c1_82, %c0_83] : memref<18x64xf32, #tpu.memory_space<vmem>>, vector<16x64xf32>
    %c1_84 = arith.constant 1 : index
    %c0_85 = arith.constant 0 : index
    %c0_86 = arith.constant 0 : index
    %72 = vector.load %arg7[%c1_84, %c0_85, %c0_86] : memref<3x64x64xf32, #tpu.memory_space<vmem>>, vector<1x64x64xf32>
    %73 = vector.shape_cast %72 : vector<1x64x64xf32> to vector<64x64xf32>
    %cst_87 = arith.constant dense<0.000000e+00> : vector<16x64xf32>
    %74 = tpu.matmul %71, %73, %cst_87 {dimension_numbers = #tpu.dot_dimension_numbers<[1], [0], [0], [1], [0, 0, 1, 1], [], []>} : vector<16x64xf32>, vector<64x64xf32>, vector<16x64xf32> -> vector<16x64xf32>
    %75 = arith.addf %70, %74 : vector<16x64xf32>
    %c2_88 = arith.constant 2 : index
    %c0_89 = arith.constant 0 : index
    %76 = vector.load %arg14[%c2_88, %c0_89] : memref<18x64xf32, #tpu.memory_space<vmem>>, vector<16x64xf32>
    %c2_90 = arith.constant 2 : index
    %c0_91 = arith.constant 0 : index
    %c0_92 = arith.constant 0 : index
    %77 = vector.load %arg7[%c2_90, %c0_91, %c0_92] : memref<3x64x64xf32, #tpu.memory_space<vmem>>, vector<1x64x64xf32>
    %78 = vector.shape_cast %77 : vector<1x64x64xf32> to vector<64x64xf32>
    %cst_93 = arith.constant dense<0.000000e+00> : vector<16x64xf32>
    %79 = tpu.matmul %76, %78, %cst_93 {dimension_numbers = #tpu.dot_dimension_numbers<[1], [0], [0], [1], [0, 0, 1, 1], [], []>} : vector<16x64xf32>, vector<64x64xf32>, vector<16x64xf32> -> vector<16x64xf32>
    %80 = arith.addf %75, %79 : vector<16x64xf32>
    %c0_94 = arith.constant 0 : index
    %c0_95 = arith.constant 0 : index
    %81 = vector.load %arg10[%c0_94, %c0_95] : memref<1x64xf32, #tpu.memory_space<vmem>>, vector<1x64xf32>
    %82 = vector.broadcast %81 : vector<1x64xf32> to vector<16x64xf32>
    %83 = arith.addf %80, %82 : vector<16x64xf32>
    %cst_96 = arith.constant 0.000000e+00 : f32
    %84 = vector.broadcast %cst_96 : f32 to vector<16x64xf32>
    %85 = arith.maximumf %83, %84 : vector<16x64xf32>
    %86 = vector.shape_cast %85 : vector<16x64xf32> to vector<1x16x64xf32>
    %c0_97 = arith.constant 0 : index
    %c0_98 = arith.constant 0 : index
    %c0_99 = arith.constant 0 : index
    %87 = vector.load %arg11[%c0_97, %c0_98, %c0_99] : memref<1x16x64xf32, #tpu.memory_space<vmem>>, vector<1x16x64xf32>
    tpu.vector_store %arg11[%c0_97, %c0_98, %c0_99], %86 {strides = array<i32>} : memref<1x16x64xf32, #tpu.memory_space<vmem>>, vector<1x16x64xf32>,
    return
  }
  func.func @transform_0(%arg0: i32) -> (i32, i32, i32) {
    %c0_i32 = arith.constant 0 : i32
    %c0_i32_0 = arith.constant 0 : i32
    %c0_i32_1 = arith.constant 0 : i32
    return %arg0, %c0_i32, %c0_i32_0 : i32, i32, i32
  }
  func.func @transform_1(%arg0: i32) -> (i32, i32, i32) {
    %c0_i32 = arith.constant 0 : i32
    %c0_i32_0 = arith.constant 0 : i32
    %c0_i32_1 = arith.constant 0 : i32
    return %arg0, %c0_i32, %c0_i32_0 : i32, i32, i32
  }
  func.func @transform_2(%arg0: i32) -> (i32, i32, i32) {
    %c0_i32 = arith.constant 0 : i32
    %c0_i32_0 = arith.constant 0 : i32
    %c0_i32_1 = arith.constant 0 : i32
    %c0_i32_2 = arith.constant 0 : i32
    return %c0_i32, %c0_i32_0, %c0_i32_1 : i32, i32, i32
  }
  func.func @transform_3(%arg0: i32) -> (i32, i32, i32) {
    %c0_i32 = arith.constant 0 : i32
    %c0_i32_0 = arith.constant 0 : i32
    %c0_i32_1 = arith.constant 0 : i32
    %c0_i32_2 = arith.constant 0 : i32
    return %c0_i32, %c0_i32_0, %c0_i32_1 : i32, i32, i32
  }
  func.func @transform_4(%arg0: i32) -> (i32, i32, i32) {
    %c0_i32 = arith.constant 0 : i32
    %c0_i32_0 = arith.constant 0 : i32
    %c0_i32_1 = arith.constant 0 : i32
    %c0_i32_2 = arith.constant 0 : i32
    return %c0_i32, %c0_i32_0, %c0_i32_1 : i32, i32, i32
  }
  func.func @transform_5(%arg0: i32) -> (i32, i32, i32) {
    %c0_i32 = arith.constant 0 : i32
    %c0_i32_0 = arith.constant 0 : i32
    %c0_i32_1 = arith.constant 0 : i32
    %c0_i32_2 = arith.constant 0 : i32
    return %c0_i32, %c0_i32_0, %c0_i32_1 : i32, i32, i32
  }
  func.func @transform_6(%arg0: i32) -> (i32, i32, i32) {
    %c0_i32 = arith.constant 0 : i32
    %c0_i32_0 = arith.constant 0 : i32
    %c0_i32_1 = arith.constant 0 : i32
    %c0_i32_2 = arith.constant 0 : i32
    return %c0_i32, %c0_i32_0, %c0_i32_1 : i32, i32, i32
  }
  func.func @transform_7(%arg0: i32) -> (i32, i32) {
    %c0_i32 = arith.constant 0 : i32
    %c0_i32_0 = arith.constant 0 : i32
    %c0_i32_1 = arith.constant 0 : i32
    return %c0_i32, %c0_i32_0 : i32, i32
  }
  func.func @transform_8(%arg0: i32) -> (i32, i32) {
    %c0_i32 = arith.constant 0 : i32
    %c0_i32_0 = arith.constant 0 : i32
    %c0_i32_1 = arith.constant 0 : i32
    return %c0_i32, %c0_i32_0 : i32, i32
  }
  func.func @transform_9(%arg0: i32) -> (i32, i32) {
    %c0_i32 = arith.constant 0 : i32
    %c0_i32_0 = arith.constant 0 : i32
    %c0_i32_1 = arith.constant 0 : i32
    return %c0_i32, %c0_i32_0 : i32, i32
  }
  func.func @transform_10(%arg0: i32) -> (i32, i32, i32) {
    %c0_i32 = arith.constant 0 : i32
    %c0_i32_0 = arith.constant 0 : i32
    %c0_i32_1 = arith.constant 0 : i32
    return %arg0, %c0_i32, %c0_i32_0 : i32, i32, i32
  }
}

</mosaic_0001>

<bundles_post_ra>
// kernel: tile.23
= control target key start
LH: loop header
LB: loop body
LE: loop exit
PB: predicated region body
PF: predicated region fallthrough
CT: control target
= control target key end

     0   :  { %s28_s0 = inlined_call_operand.vmem [shape: f32[4], index: 0, kind: input, shape index: {}]   ;;  %s29_s1 = inlined_call_operand.vmem [shape: f32[16,4], index: 1, kind: output, shape index: {}]  }
   0x1   :  { %v4_v0 = vld [vmem:[%s28_s0] ss:$0 sm:$0xff] }
   0x2   :  { %5 = vst [vmem:[%s29_s1] sm:$0xff] %v4_v0  ;;  %8 = vst [vmem:[%s29_s1 + $0x8] sm:$0xff] %v4_v0 }

// kernel: tile.24
= control target key start
LH: loop header
LB: loop body
LE: loop exit
PB: predicated region body
PF: predicated region fallthrough
CT: control target
= control target key end

     0   :  { %s133_s10 = smov 60   ;;  %s134_s11 = smov 52   ;;  %vm3_vm0 = vcmask 31744   ;;  %vm9_vm1 = vcmask 523744   ;;  %vm15_vm2 = vcmask 490944   ;;  %vm21_vm3 = vcmask 458144   ;;  %s209_s0 = inlined_call_operand.vmem [shape: f32[16,4], index: 0, kind: input, shape index: {}]   ;;  %s210_s1 = inlined_call_operand.vmem [shape: f32[1,64], index: 1, kind: output, shape index: {}]  }
   0x1   :  { %v103_v0 = vld [vmem:[%s209_s0 + $0xf] sm:$0x1]   ;;  %v105_v1 = vld [vmem:[%s209_s0 + $0xd] sm:$0x1]   ;;  %v104_v2 = vld [vmem:[%s209_s0 + $0xe] sm:$0x1]  }
   0x2   :  { %7 = vrot.lane.b32.xlu0 %v103_v0, %s133_s10  ;;  %19 = vrot.lane.b32.xlu1 %v105_v1, %s134_s11  ;;  %v106_v3 = vld [vmem:[%s209_s0 + $0xc] sm:$0x1]   ;;  %s135_s16 = smov 56   ;;  %s136_s17 = smov 48   ;;  %v107_v4 = vld [vmem:[%s209_s0 + $0xb] sm:$0x1]  }
   0x3   :  { %v108_v5 = vld [vmem:[%s209_s0 + $0xa] sm:$0x1]   ;;  %v2_v6 = vld [vmem:[%s209_s0] sm:$0x1]   ;;  %s137_s24 = smov 44   ;;  %s138_s25 = smov 40  }
   0x4   :  { %4 = vst.msk [vmem:[#allocation0] sm:$0x1] %vm3_vm0, %v2_v6   ;;  %v109_v7 = vld [vmem:[%s209_s0 + $0x9] sm:$0x1]   ;;  %v110_v8 = vld [vmem:[%s209_s0 + $0x8] sm:$0x1]  }
   0x5   :  { %s139_s30 = smov 36   ;;  %s140_s2 = smov 32   ;;  %v111_v9 = vld [vmem:[%s209_s0 + $0x7] sm:$0x1]   ;;  %v112_v10 = vld [vmem:[%s209_s0 + $0x6] sm:$0x1]  }
   0x6   :  { %13 = vrot.lane.b32.xlu0 %v104_v2, %s135_s16  ;;  %25 = vrot.lane.b32.xlu1 %v106_v3, %s136_s17  ;;  %s141_s7 = smov 28   ;;  %s142_s8 = smov 24   ;;  %v113_v11 = vld [vmem:[%s209_s0 + $0x5] sm:$0x1]   ;;  %v114_v12 = vld [vmem:[%s209_s0 + $0x4] sm:$0x1]  }
   0x7   :  { %s143_s13 = smov 20   ;;  %s144_s14 = smov 16   ;;  %v115_v13 = vld [vmem:[%s209_s0 + $0x3] sm:$0x1]   ;;  %v116_v14 = vld [vmem:[%s209_s0 + $0x2] sm:$0x1]  }
   0x8   :  { %s145_s19 = smov 12   ;;  %s146_s20 = smov 8   ;;  %v117_v15 = vld [vmem:[%s209_s0 + $0x1] sm:$0x1]   ;;  %vm27_vm4 = vcmask 425344   ;;  %vm33_vm5 = vcmask 392544  }
   0x9   :  { %s147_s0 = smov 4   ;;  %vm39_vm6 = vcmask 359744   ;;  %vm45_vm7 = vcmask 326944   ;;  %vm51_vm8 = vcmask 294144   ;;  %vm57_vm9 = vcmask 261344  }
   0xa   :  { %31 = vrot.lane.b32.xlu0 %v107_v4, %s137_s24  ;;  %37 = vrot.lane.b32.xlu1 %v108_v5, %s138_s25  ;;  %vm63_vm10 = vcmask 228544   ;;  %vm69_vm11 = vcmask 195744   ;;  %vm75_vm12 = vcmask 162944   ;;  %vm81_vm13 = vcmask 130144  }
   0xb   :  { %vm87_vm14 = vcmask 97344   ;;  %vm93_vm15 = vcmask 64544  }
   0xe   :  { %43 = vrot.lane.b32.xlu0 %v109_v7, %s139_s30  ;;  %49 = vrot.lane.b32.xlu1 %v110_v8, %s140_s2 }
  0x12   :  { %55 = vrot.lane.b32.xlu0 %v111_v9, %s141_s7  ;;  %61 = vrot.lane.b32.xlu1 %v112_v10, %s142_s8 }
  0x16   :  { %67 = vrot.lane.b32.xlu0 %v113_v11, %s143_s13  ;;  %73 = vrot.lane.b32.xlu1 %v114_v12, %s144_s14 }
  0x1a   :  { %79 = vrot.lane.b32.xlu0 %v115_v13, %s145_s19  ;;  %85 = vrot.lane.b32.xlu1 %v116_v14, %s146_s20 }
  0x1e   :  { %91 = vrot.lane.b32.xlu0 %v117_v15, %s147_s0 }
  0x74   :  { %v8_v16 = vpop.permute.xlu0 %7   ;;  %v20_v17 = vpop.permute.xlu1 %19  }
  0x75   :  { %10 = vst.msk [vmem:[#allocation0] sm:$0x1] %vm9_vm1, %v8_v16  }
  0x78   :  { %v14_v18 = vpop.permute.xlu0 %13   ;;  %v26_v19 = vpop.permute.xlu1 %25  }
  0x79   :  { %16 = vst.msk [vmem:[#allocation0] sm:$0x1] %vm15_vm2, %v14_v18  }
  0x7a   :  { %22 = vst.msk [vmem:[#allocation0] sm:$0x1] %vm21_vm3, %v20_v17  }
  0x7b   :  { %28 = vst.msk [vmem:[#allocation0] sm:$0x1] %vm27_vm4, %v26_v19  }
  0x7c   :  { %v32_v20 = vpop.permute.xlu0 %31   ;;  %v38_v21 = vpop.permute.xlu1 %37  }
  0x7d   :  { %34 = vst.msk [vmem:[#allocation0] sm:$0x1] %vm33_vm5, %v32_v20  }
  0x7e   :  { %40 = vst.msk [vmem:[#allocation0] sm:$0x1] %vm39_vm6, %v38_v21  }
  0x80   :  { %v44_v22 = vpop.permute.xlu0 %43   ;;  %v50_v23 = vpop.permute.xlu1 %49  }
  0x81   :  { %46 = vst.msk [vmem:[#allocation0] sm:$0x1] %vm45_vm7, %v44_v22  }
  0x82   :  { %52 = vst.msk [vmem:[#allocation0] sm:$0x1] %vm51_vm8, %v50_v23  }
  0x84   :  { %v56_v24 = vpop.permute.xlu0 %55   ;;  %v62_v25 = vpop.permute.xlu1 %61  }
  0x85   :  { %58 = vst.msk [vmem:[#allocation0] sm:$0x1] %vm57_vm9, %v56_v24  }
  0x86   :  { %64 = vst.msk [vmem:[#allocation0] sm:$0x1] %vm63_vm10, %v62_v25  }
  0x88   :  { %v68_v26 = vpop.permute.xlu0 %67   ;;  %v74_v27 = vpop.permute.xlu1 %73  }
  0x89   :  { %70 = vst.msk [vmem:[#allocation0] sm:$0x1] %vm69_vm11, %v68_v26  }
  0x8a   :  { %76 = vst.msk [vmem:[#allocation0] sm:$0x1] %vm75_vm12, %v74_v27  }
  0x8c   :  { %v80_v28 = vpop.permute.xlu0 %79   ;;  %v86_v29 = vpop.permute.xlu1 %85  }
  0x8d   :  { %82 = vst.msk [vmem:[#allocation0] sm:$0x1] %vm81_vm13, %v80_v28  }
  0x8e   :  { %88 = vst.msk [vmem:[#allocation0] sm:$0x1] %vm87_vm14, %v86_v29  }
  0x90   :  { %v92_v30 = vpop.permute.xlu0 %91  }
  0x91   :  { %94 = vst.msk [vmem:[#allocation0] sm:$0x1] %vm93_vm15, %v92_v30  }
  0x98   :  { %v99_v31 = vld [vmem:[#allocation0] sm:$0x1] }
  0x99   :  { %102 = vst [vmem:[%s210_s1] sm:$0x1] %v99_v31 }

// kernel: up_forward.1
= control target key start
LH: loop header
LB: loop body
LE: loop exit
PB: predicated region body
PF: predicated region fallthrough
CT: control target
= control target key end

     0   :  { %s2132_s13 = smov 0   ;;  %s2461_s0 = inlined_call_operand.vmem [shape: f32[2,8,32], index: 0, kind: input, shape index: {}]   ;;  %s2462_s1 = inlined_call_operand.vmem [shape: f32[2,16,64], index: 1, kind: input, shape index: {}]   ;;  %s2463_s2 = inlined_call_operand.vmem [shape: f32[2,32,64], index: 2, kind: input, shape index: {}]   ;;  %s2464_s3 = inlined_call_operand.vmem [shape: f32[2,16,8], index: 3, kind: input, shape index: {}]   ;;  %s2465_s4 = inlined_call_operand.vmem [shape: f32[3,64,64], index: 4, kind: input, shape index: {}]   ;;  %s2466_s5 = inlined_call_operand.vmem [shape: f32[3,64,64], index: 5, kind: input, shape index: {}]   ;;  %s2467_s6 = inlined_call_operand.vmem [shape: f32[3,64,64], index: 6, kind: input, shape index: {}]   ;;  %s2468_s7 = inlined_call_operand.vmem [shape: f32[1,64], index: 7, kind: input, shape index: {}]   ;;  %s2469_s8 = inlined_call_operand.vmem [shape: f32[1,64], index: 8, kind: input, shape index: {}]   ;;  %s2470_s9 = inlined_call_operand.vmem [shape: f32[1,64], index: 9, kind: input, shape index: {}]   ;;  %s2471_s10 = inlined_call_operand.vmem [shape: f32[2,16,64], index: 10, kind: output, shape index: {}]  }
   0x1 LB: > { %s1653_s14 = sadd.s32 4294967295, %s2073_s13   ;;  %p1657_p0 = scmp.ge.s32.totalorder %s2073_s13, 1  ;;  %s2073_s13 = sphi %s2132_s13, %s20_s13  }
   0x2   : > { %p321_p1 = scmp.lt.s32.totalorder %s2073_s13, 3 }
   0x4   : > { %p322_p2 = pnand %p1657_p0, %p321_p1 }
   0x5   : > { %p363_p3 = scmp.lt.s32.totalorder (!%p322_p2), %s1653_s14, 1 }
   0x6   : > { %325 = sbr.rel (%p322_p2) target bundleno = 895 (0x37f), region = 60 }
   0xb   : > { %v381_v0 = vld [vmem:[%s2463_s2 + $0x18] sm:$0xff]  ;;  %v2075_v1 = vmov 0.0   ;;  %v380_v2 = vld [vmem:[%s2463_s2 + $0x10] sm:$0xff]  ;;  %vm2076_vm0 = vmmov 0   ;;  %vm708_vm1 = vcmask 523264   ;;  %vm711_vm2 = vcmask 517120  }
   0xc   : > { %1854 = vmatprep.subr.mxu1 %v2075_v1  ;;  %1862 = vmatprep.mubr.msk.f32.mxu1 %vm2076_vm0, %v2075_v1  ;;  %s2473_s14 = smov (!%p363_p3, %s1653_s14), 1  ;;  %713 = vst.msk [vmem:[#allocation3] sm:$0xff] %vm708_vm1, %v2075_v1  ;;  %714 = vst.msk [vmem:[#allocation3 + $0x8] sm:$0xff] %vm708_vm1, %v2075_v1  ;;  %v379_v3 = vld [vmem:[%s2463_s2 + $0x8] sm:$0xff]  ;;  %v378_v4 = vld [vmem:[%s2463_s2] sm:$0xff]  ;;  %vm382_vm3 = vcmask 261120  }
   0xd   : > { %1855 = vmatpush3.msra.mxu1 %v381_v0  ;;  %715 = vst.msk [vmem:[#allocation3 + $0x10] sm:$0x3] %vm711_vm2, %v2075_v1  ;;  %712 = vst.msk [vmem:[#allocation2 + $0x10] sm:$0x3] %vm711_vm2, %v2075_v1  ;;  %s1658_s21 = sshll.u32 %s2473_s14, 3  ;;  %s1746_s22 = sshll.u32 %s2473_s14, 4 }
   0xe   : > { %709 = vst.msk [vmem:[#allocation2] sm:$0xff] %vm708_vm1, %v2075_v1  ;;  %710 = vst.msk [vmem:[#allocation2 + $0x8] sm:$0xff] %vm708_vm1, %v2075_v1  ;;  %1856 = vmatprep.subr.mxu1 %v2075_v1  ;;  %s366_s27 = scalar_lea.vmem %s2461_s0, %s1658_s21  ;;  %s371_s30 = scalar_lea.vmem %s2462_s1, %s1746_s22  ;;  %v1667_v8 = vld [vmem:[%s2463_s2 + $0x38] sm:$0xff]  ;;  %v1666_v9 = vld [vmem:[%s2463_s2 + $0x30] sm:$0xff]  ;;  %vm536_vm4 = vcmask 64512  }
   0xf   : > { %1291 = vst.msk [vmem:[#allocation4] sm:$0xff] %vm708_vm1, %v2075_v1  ;;  %1292 = vst.msk [vmem:[#allocation4 + $0x8] sm:$0xff] %vm708_vm1, %v2075_v1  ;;  %1857 = vmatpush3.msra.mxu1 %v380_v2  ;;  %v377_v5 = vld [vmem:[%s366_s27] sm:$0xff]  ;;  %v719_v7 = vld [vmem:[%s371_s30 + $0x8] sm:$0xff]  ;;  %s376_s29 = scalar_lea.vmem %s2471_s10, %s1746_s22 }
  0x10   : > { %1293 = vst.msk [vmem:[#allocation4 + $0x10] sm:$0x3] %vm711_vm2, %v2075_v1  ;;  %1858 = vmatprep.subr.mxu1 %v2075_v1  ;;  %v718_v6 = vld [vmem:[%s371_s30] sm:$0xff]  ;;  %v1665_v10 = vld [vmem:[%s2463_s2 + $0x28] sm:$0xff]  ;;  %v1669_v13 = vld [vmem:[%s2464_s3 + $0x10] sm:$0xff] }
  0x11   : > { %1859 = vmatpush3.msra.mxu1 %v379_v3  ;;  %720 = vst.msk [vmem:[#allocation3 + $0x1] sm:$0xff] %vm708_vm1, %v718_v6  ;;  %721 = vst.msk [vmem:[#allocation3 + $0x9] sm:$0xff] %vm708_vm1, %v719_v7  ;;  %v1664_v11 = vld [vmem:[%s2463_s2 + $0x20] sm:$0xff]  ;;  %1878 = vmatprep.mubr.msk.f32.mxu0 %vm536_vm4, %v1669_v13  ;;  %v532_v15 = vld [vmem:[%s2464_s3 + $0x8] sm:$0xff] }
  0x12   : > { %1860 = vmatprep.subr.mxu1 %v2075_v1  ;;  %v531_v12 = vld [vmem:[%s2464_s3] sm:$0xff]  ;;  %v731_v16 = vld [vmem:[%s2465_s4 + $0x38] sm:$0xff]  ;;  %v730_v18 = vld [vmem:[%s2465_s4 + $0x30] sm:$0xff] }
  0x13   : > { %1861 = vmatpush3.msra.mxu1 %v378_v4  ;;  %v729_v19 = vld [vmem:[%s2465_s4 + $0x28] sm:$0xff]  ;;  %v728_v20 = vld [vmem:[%s2465_s4 + $0x20] sm:$0xff]  ;;  %v1670_v22 = vld [vmem:[%s2464_s3 + $0x18] sm:$0xff] }
  0x14   : > { %1863 = vmatmul.mubr.msk.f32.vlgmr.msra.gmra.mxu1 %vm382_vm3, %v377_v5  ;;  %1865 = vmatprep.subr.mxu1 %v2075_v1  ;;  %v727_v23 = vld [vmem:[%s2465_s4 + $0x18] sm:$0xff]  ;;  %v726_v25 = vld [vmem:[%s2465_s4 + $0x10] sm:$0xff]  ;;  %v725_v26 = vld [vmem:[%s2465_s4 + $0x8] sm:$0xff] }
  0x15   : > { %1866 = vmatpush3.msra.mxu1 %v1667_v8  ;;  %1873 = vmatprep.mubr.msk.f32.mxu1 %vm2076_vm0, %v2075_v1  ;;  %v724_v27 = vld [vmem:[%s2465_s4] sm:$0xff]  ;;  %v741_v28 = vld [vmem:[%s2466_s5 + $0x38] sm:$0xff]  ;;  %v740_v32 = vld [vmem:[%s2466_s5 + $0x30] sm:$0xff] }
  0x16   : > { %1867 = vmatprep.subr.mxu1 %v2075_v1  ;;  %v1697_v30 = vld [vmem:[%s2466_s5 + $0x78] sm:$0xff]  ;;  %v1696_v33 = vld [vmem:[%s2466_s5 + $0x70] sm:$0xff]  ;;  %v739_v34 = vld [vmem:[%s2466_s5 + $0x28] sm:$0xff] }
  0x17   : > { %1868 = vmatpush3.msra.mxu1 %v1666_v9  ;;  %v1695_v35 = vld [vmem:[%s2466_s5 + $0x68] sm:$0xff]  ;;  %v738_v36 = vld [vmem:[%s2466_s5 + $0x20] sm:$0xff]  ;;  %v737_v38 = vld [vmem:[%s2466_s5 + $0x18] sm:$0xff] }
  0x18   : > { %1869 = vmatprep.subr.mxu1 %v2075_v1  ;;  %v722_v29 = vld [vmem:[#allocation3] sm:$0xff]  ;;  %v723_v31 = vld [vmem:[#allocation3 + $0x8] sm:$0xff]  ;;  %v736_v40 = vld [vmem:[%s2466_s5 + $0x10] sm:$0xff] }
  0x19   : > { %1870 = vmatpush3.msra.mxu1 %v1665_v10  ;;  %v1694_v37 = vld [vmem:[%s2466_s5 + $0x60] sm:$0xff]  ;;  %v1693_v39 = vld [vmem:[%s2466_s5 + $0x58] sm:$0xff]  ;;  %v1692_v41 = vld [vmem:[%s2466_s5 + $0x50] sm:$0xff] }
  0x1a   : > { %1871 = vmatprep.subr.mxu1 %v2075_v1  ;;  %v735_v42 = vld [vmem:[%s2466_s5 + $0x8] sm:$0xff]  ;;  %v734_v44 = vld [vmem:[%s2466_s5] sm:$0xff]  ;;  %v1687_v46 = vld [vmem:[%s2465_s4 + $0x78] sm:$0xff] }
  0x1b   : > { %1872 = vmatpush3.msra.mxu1 %v1664_v11  ;;  %v1691_v43 = vld [vmem:[%s2466_s5 + $0x48] sm:$0xff]  ;;  %v1690_v45 = vld [vmem:[%s2466_s5 + $0x40] sm:$0xff]  ;;  %v1717_v47 = vld [vmem:[%s2466_s5 + $0xb8] sm:$0xff] }
  0x1c   : > { %1874 = vmatmul.mubr.msk.f32.vlgmr.msra.gmra.mxu1 %vm382_vm3, %v377_v5  ;;  %v1675_v50 = vld [vmem:[%s2468_s7] ss:$0 sm:$0xff]  ;;  %v1686_v61 = vld [vmem:[%s2465_s4 + $0x70] sm:$0xff]  ;;  %v1685_v63 = vld [vmem:[%s2465_s4 + $0x68] sm:$0xff] }
  0x1d   : > { %1883 = vmatprep.mubr.msk.f32.mxu1 %vm536_vm4, %v531_v12  ;;  %v1716_v62 = vld [vmem:[%s2466_s5 + $0xb0] sm:$0xff]  ;;  %v1715_v1 = vld [vmem:[%s2466_s5 + $0xa8] sm:$0xff]  ;;  %v1684_v2 = vld [vmem:[%s2465_s4 + $0x60] sm:$0xff] }
  0x1e   : > { %v1714_v3 = vld [vmem:[%s2466_s5 + $0xa0] sm:$0xff]  ;;  %v1683_v4 = vld [vmem:[%s2465_s4 + $0x58] sm:$0xff]  ;;  %v1682_v6 = vld [vmem:[%s2465_s4 + $0x50] sm:$0xff] }
  0x1f   : > { %v1713_v5 = vld [vmem:[%s2466_s5 + $0x98] sm:$0xff]  ;;  %v1712_v7 = vld [vmem:[%s2466_s5 + $0x90] sm:$0xff]  ;;  %v1681_v8 = vld [vmem:[%s2465_s4 + $0x48] sm:$0xff] }
  0x20   : > { %v1711_v9 = vld [vmem:[%s2466_s5 + $0x88] sm:$0xff]  ;;  %v1680_v10 = vld [vmem:[%s2465_s4 + $0x40] sm:$0xff] }
  0x21   : > { %v1710_v11 = vld [vmem:[%s2466_s5 + $0x80] sm:$0xff] }
  0x22   : > { %v904_v12 = vld [vmem:[#allocation3 + $0x1] sm:$0xff]  ;;  %v905_v13 = vld [vmem:[#allocation3 + $0x9] sm:$0xff] }
  0xd4   : > { %v452_v14 = vpop.f32.mrf.mxu1 }
  0xd5   : > { %1881 = vmatprep.subr.mxu1 %v452_v14 }
  0xd6   : > { %v1864_v17 = vpop.f32.mrf.mxu1  ;;  %1882 = vmatpush3.msra.mxu1 %v452_v14  ;;  %v1707_v14 = vld [vmem:[%s2465_s4 + $0xb8] sm:$0xff] }
  0xd7   : > { %1884 = vmatmul.mubr.msk.f32.vlgmr.msra.gmra.mxu1 %vm536_vm4, %v532_v15  ;;  %1905 = vmatprep.subr.mxu1 %v731_v16  ;;  %v1706_v15 = vld [vmem:[%s2465_s4 + $0xb0] sm:$0xff] }
  0xd8   : > { %1906 = vmatpush3.msra.mxu1 %v731_v16  ;;  %1921 = vmatprep.mubr.msk.f32.mxu1 %vm708_vm1, %v722_v29  ;;  %v1092_v16 = vld [vmem:[#allocation3 + $0x2] sm:$0xff]  ;;  %v1726_v29 = vld [vmem:[%s2467_s6 + $0x68] sm:$0xff] }
  0xd9   : > { %1907 = vmatprep.subr.mxu1 %v730_v18 }
  0xda   : > { %1908 = vmatpush3.msra.mxu1 %v730_v18  ;;  %v1705_v18 = vld [vmem:[%s2465_s4 + $0xa8] sm:$0xff] }
  0xdb   : > { %1909 = vmatprep.subr.mxu1 %v729_v19 }
  0xdc   : > { %v527_v21 = vpop.f32.mrf.mxu1  ;;  %1910 = vmatpush3.msra.mxu1 %v729_v19  ;;  %v1704_v19 = vld [vmem:[%s2465_s4 + $0xa0] sm:$0xff] }
  0xdd   : > { %1876 = vmatprep.subr.mxu0 %v527_v21  ;;  %1911 = vmatprep.subr.mxu1 %v728_v20 }
  0xde   : > { %v1875_v24 = vpop.f32.mrf.mxu1  ;;  %1877 = vmatpush3.msra.mxu0 %v527_v21  ;;  %1912 = vmatpush3.msra.mxu1 %v728_v20  ;;  %v1703_v20 = vld [vmem:[%s2465_s4 + $0x98] sm:$0xff]  ;;  %v1702_v21 = vld [vmem:[%s2465_s4 + $0x90] sm:$0xff] }
  0xdf   : > { %1879 = vmatmul.mubr.msk.f32.vlgmr.msra.gmra.mxu0 %vm536_vm4, %v1670_v22  ;;  %1913 = vmatprep.subr.mxu1 %v727_v23  ;;  %v1701_v22 = vld [vmem:[%s2465_s4 + $0x88] sm:$0xff] }
  0xe0   : > { %1914 = vmatpush3.msra.mxu1 %v727_v23  ;;  %1886 = vmatprep.subr.mxu0 %v741_v28  ;;  %v1700_v23 = vld [vmem:[%s2465_s4 + $0x80] sm:$0xff] }
  0xe1   : > { %1915 = vmatprep.subr.mxu1 %v726_v25  ;;  %1887 = vmatpush3.msra.mxu0 %v741_v28  ;;  %v1093_v24 = vld [vmem:[#allocation3 + $0xa] sm:$0xff]  ;;  %v1304_v28 = vld [vmem:[%s2467_s6 + $0x30] sm:$0xff] }
  0xe2   : > { %1916 = vmatpush3.msra.mxu1 %v726_v25  ;;  %1888 = vmatprep.subr.mxu0 %v740_v32  ;;  %v1728_v25 = vld [vmem:[%s2467_s6 + $0x78] sm:$0xff] }
  0xe3   : > { %1917 = vmatprep.subr.mxu1 %v725_v26  ;;  %1889 = vmatpush3.msra.mxu0 %v740_v32  ;;  %v1302_v32 = vld [vmem:[%s2467_s6 + $0x20] sm:$0xff] }
  0xe4   : > { %1918 = vmatpush3.msra.mxu1 %v725_v26  ;;  %1890 = vmatprep.subr.mxu0 %v739_v34  ;;  %v1305_v26 = vld [vmem:[%s2467_s6 + $0x38] sm:$0xff] }
  0xe5   : > { %1919 = vmatprep.subr.mxu1 %v724_v27  ;;  %1891 = vmatpush3.msra.mxu0 %v739_v34  ;;  %v1301_v34 = vld [vmem:[%s2467_s6 + $0x18] sm:$0xff] }
  0xe6   : > { %1920 = vmatpush3.msra.mxu1 %v724_v27  ;;  %1892 = vmatprep.subr.mxu0 %v738_v36  ;;  %v1727_v27 = vld [vmem:[%s2467_s6 + $0x70] sm:$0xff] }
  0xe7   : > { %1943 = vmatprep.subr.mxu1 %v1697_v30  ;;  %1922 = vmatmul.mubr.msk.f32.vlgmr.msra.gmra.mxu1 %vm708_vm1, %v723_v31  ;;  %v1725_v31 = vld [vmem:[%s2467_s6 + $0x60] sm:$0xff] }
  0xe8   : > { %1944 = vmatpush3.msra.mxu1 %v1697_v30  ;;  %1893 = vmatpush3.msra.mxu0 %v738_v36  ;;  %v1303_v30 = vld [vmem:[%s2467_s6 + $0x28] sm:$0xff]  ;;  %v1300_v36 = vld [vmem:[%s2467_s6 + $0x10] sm:$0xff] }
  0xe9   : > { %1945 = vmatprep.subr.mxu1 %v1696_v33  ;;  %1894 = vmatprep.subr.mxu0 %v737_v38 }
  0xea   : > { %1946 = vmatpush3.msra.mxu1 %v1696_v33  ;;  %1895 = vmatpush3.msra.mxu0 %v737_v38  ;;  %v1724_v33 = vld [vmem:[%s2467_s6 + $0x58] sm:$0xff]  ;;  %v1299_v38 = vld [vmem:[%s2467_s6 + $0x8] sm:$0xff] }
  0xeb   : > { %1947 = vmatprep.subr.mxu1 %v1695_v35  ;;  %1896 = vmatprep.subr.mxu0 %v736_v40 }
  0xec   : > { %1948 = vmatpush3.msra.mxu1 %v1695_v35  ;;  %1897 = vmatpush3.msra.mxu0 %v736_v40  ;;  %v1723_v35 = vld [vmem:[%s2467_s6 + $0x50] sm:$0xff]  ;;  %v1298_v40 = vld [vmem:[%s2467_s6] sm:$0xff] }
  0xed   : > { %1949 = vmatprep.subr.mxu1 %v1694_v37  ;;  %1898 = vmatprep.subr.mxu0 %v735_v42 }
  0xee   : > { %1950 = vmatpush3.msra.mxu1 %v1694_v37  ;;  %1899 = vmatpush3.msra.mxu0 %v735_v42  ;;  %v1722_v37 = vld [vmem:[%s2467_s6 + $0x48] sm:$0xff] }
  0xef   : > { %1951 = vmatprep.subr.mxu1 %v1693_v39  ;;  %1900 = vmatprep.subr.mxu0 %v734_v44 }
  0xf0   : > { %1952 = vmatpush3.msra.mxu1 %v1693_v39  ;;  %1901 = vmatpush3.msra.mxu0 %v734_v44  ;;  %v1721_v39 = vld [vmem:[%s2467_s6 + $0x40] sm:$0xff] }
  0xf1   : > { %1953 = vmatprep.subr.mxu1 %v1692_v41  ;;  %1924 = vmatprep.subr.mxu0 %v1687_v46 }
  0xf2   : > { %1954 = vmatpush3.msra.mxu1 %v1692_v41  ;;  %v1740_v41 = vld [vmem:[%s2467_s6 + $0xb8] sm:$0xff] }
  0xf3   : > { %1955 = vmatprep.subr.mxu1 %v1691_v43 }
  0xf4   : > { %1956 = vmatpush3.msra.mxu1 %v1691_v43 }
  0xf5   : > { %1957 = vmatprep.subr.mxu1 %v1690_v45 }
  0xf6   : > { %1958 = vmatpush3.msra.mxu1 %v1690_v45 }
  0xf7   : > { %1981 = vmatprep.subr.mxu1 %v1717_v47 }
 0x197   : > { %v1885_v48 = vpop.f32.mrf.mxu1 }
 0x199   : > { %v690_v52 = vpop.f32.mrf.mxu1 }
 0x19f   : > { %v1880_v49 = vpop.f32.mrf.mxu0 }
 0x1a0   : > { %v696_v51 = vadd.f32 %v1885_v48, %v1880_v49 }
 0x1a1   : > { %v609_v53 = vpop.f32.mrf.mxu0 }
 0x1a2   : > { %v707_v54 = vadd.f32 %v1675_v50, %v696_v51  ;;  %v691_v55 = vadd.f32 %v690_v52, %v609_v53 }
 0x1a4   : > { %717 = vst.msk [vmem:[#allocation2 + $0x9] sm:$0xff] %vm708_vm1, %v707_v54  ;;  %v706_v56 = vadd.f32 %v1675_v50, %v691_v55 }
 0x1a6   : > { %716 = vst.msk [vmem:[#allocation2 + $0x1] sm:$0xff] %vm708_vm1, %v706_v56 }
 0x1a7   : > { %v1923_v43 = vpop.f32.mrf.mxu1 }
 0x1a9   : > { %v895_v45 = vpop.f32.mrf.mxu1 }
 0x1ab   : > { %v999_v60 = vld [vmem:[#allocation2 + $0x9] sm:$0xff] }
 0x1ac   : > { %v1187_v17 = vld [vmem:[#allocation2 + $0xa] sm:$0xff] }
 0x1ad   : > { %v732_v57 = vld [vmem:[#allocation2] sm:$0xff]  ;;  %v733_v59 = vld [vmem:[#allocation2 + $0x8] sm:$0xff] }
 0x1ae   : > { %v998_v58 = vld [vmem:[#allocation2 + $0x1] sm:$0xff]  ;;  %1902 = vmatprep.mubr.msk.f32.mxu0 %vm708_vm1, %v732_v57 }
 0x1af   : > { %1959 = vmatprep.mubr.msk.f32.mxu1 %vm708_vm1, %v998_v58  ;;  %1903 = vmatmul.mubr.msk.f32.vlgmr.msra.gmra.mxu0 %vm708_vm1, %v733_v59  ;;  %v1186_v0 = vld [vmem:[#allocation2 + $0x2] sm:$0xff]  ;;  %v1720_v59 = vld [vmem:[%s2469_s8] ss:$0 sm:$0xff] }
 0x1b0   : > { %1960 = vmatmul.mubr.msk.f32.vlgmr.msra.gmra.mxu1 %vm708_vm1, %v999_v60  ;;  %1925 = vmatpush3.msra.mxu0 %v1687_v46 }
 0x1b1   : > { %1982 = vmatpush3.msra.mxu1 %v1717_v47  ;;  %1926 = vmatprep.subr.mxu0 %v1686_v61 }
 0x1b2   : > { %1983 = vmatprep.subr.mxu1 %v1716_v62  ;;  %1997 = vmatprep.mubr.msk.f32.mxu1 %vm708_vm1, %v1186_v0 }
 0x1b3   : > { %1927 = vmatpush3.msra.mxu0 %v1686_v61  ;;  %1984 = vmatpush3.msra.mxu1 %v1716_v62 }
 0x1b4   : > { %1928 = vmatprep.subr.mxu0 %v1685_v63  ;;  %1985 = vmatprep.subr.mxu1 %v1715_v1 }
 0x1b5   : > { %1929 = vmatpush3.msra.mxu0 %v1685_v63  ;;  %1986 = vmatpush3.msra.mxu1 %v1715_v1 }
 0x1b6   : > { %1930 = vmatprep.subr.mxu0 %v1684_v2  ;;  %1987 = vmatprep.subr.mxu1 %v1714_v3 }
 0x1b7   : > { %1931 = vmatpush3.msra.mxu0 %v1684_v2  ;;  %1988 = vmatpush3.msra.mxu1 %v1714_v3 }
 0x1b8   : > { %1932 = vmatprep.subr.mxu0 %v1683_v4  ;;  %1989 = vmatprep.subr.mxu1 %v1713_v5 }
 0x1b9   : > { %1933 = vmatpush3.msra.mxu0 %v1683_v4  ;;  %1990 = vmatpush3.msra.mxu1 %v1713_v5 }
 0x1ba   : > { %1934 = vmatprep.subr.mxu0 %v1682_v6  ;;  %1991 = vmatprep.subr.mxu1 %v1712_v7 }
 0x1bb   : > { %1935 = vmatpush3.msra.mxu0 %v1682_v6  ;;  %1992 = vmatpush3.msra.mxu1 %v1712_v7 }
 0x1bc   : > { %1936 = vmatprep.subr.mxu0 %v1681_v8  ;;  %1993 = vmatprep.subr.mxu1 %v1711_v9 }
 0x1bd   : > { %1937 = vmatpush3.msra.mxu0 %v1681_v8  ;;  %1994 = vmatpush3.msra.mxu1 %v1711_v9  ;;  %v1739_v9 = vld [vmem:[%s2467_s6 + $0xb0] sm:$0xff] }
 0x1be   : > { %1938 = vmatprep.subr.mxu0 %v1680_v10  ;;  %1995 = vmatprep.subr.mxu1 %v1710_v11 }
 0x1bf   : > { %1939 = vmatpush3.msra.mxu0 %v1680_v10  ;;  %1940 = vmatprep.mubr.msk.f32.mxu0 %vm708_vm1, %v904_v12  ;;  %v1737_v12 = vld [vmem:[%s2467_s6 + $0xa0] sm:$0xff] }
 0x1c0   : > { %1996 = vmatpush3.msra.mxu1 %v1710_v11  ;;  %1941 = vmatmul.mubr.msk.f32.vlgmr.msra.gmra.mxu0 %vm708_vm1, %v905_v13  ;;  %v1738_v11 = vld [vmem:[%s2467_s6 + $0xa8] sm:$0xff]  ;;  %v1736_v13 = vld [vmem:[%s2467_s6 + $0x98] sm:$0xff] }
 0x1c1   : > { %1962 = vmatprep.subr.mxu0 %v1707_v14  ;;  %1998 = vmatmul.mubr.msk.f32.vlgmr.msra.gmra.mxu1 %vm708_vm1, %v1187_v17 }
 0x1c2   : > { %1963 = vmatpush3.msra.mxu0 %v1707_v14  ;;  %1978 = vmatprep.mubr.msk.f32.mxu0 %vm708_vm1, %v1092_v16  ;;  %v1735_v14 = vld [vmem:[%s2467_s6 + $0x90] sm:$0xff]  ;;  %v1733_v16 = vld [vmem:[%s2467_s6 + $0x80] sm:$0xff] }
 0x1c3   : > { %1964 = vmatprep.subr.mxu0 %v1706_v15  ;;  %2019 = vmatprep.subr.mxu1 %v1305_v26 }
 0x1c4   : > { %1965 = vmatpush3.msra.mxu0 %v1706_v15  ;;  %2020 = vmatpush3.msra.mxu1 %v1305_v26  ;;  %v1734_v15 = vld [vmem:[%s2467_s6 + $0x88] sm:$0xff] }
 0x1c5   : > { %1966 = vmatprep.subr.mxu0 %v1705_v18  ;;  %2021 = vmatprep.subr.mxu1 %v1304_v28 }
 0x1c6   : > { %1967 = vmatpush3.msra.mxu0 %v1705_v18  ;;  %2022 = vmatpush3.msra.mxu1 %v1304_v28 }
 0x1c7   : > { %1968 = vmatprep.subr.mxu0 %v1704_v19  ;;  %2023 = vmatprep.subr.mxu1 %v1303_v30 }
 0x1c8   : > { %1969 = vmatpush3.msra.mxu0 %v1704_v19  ;;  %2024 = vmatpush3.msra.mxu1 %v1303_v30 }
 0x1c9   : > { %1970 = vmatprep.subr.mxu0 %v1703_v20  ;;  %2025 = vmatprep.subr.mxu1 %v1302_v32 }
 0x1ca   : > { %1971 = vmatpush3.msra.mxu0 %v1703_v20  ;;  %2026 = vmatpush3.msra.mxu1 %v1302_v32 }
 0x1cb   : > { %1972 = vmatprep.subr.mxu0 %v1702_v21  ;;  %2027 = vmatprep.subr.mxu1 %v1301_v34 }
 0x1cc   : > { %1973 = vmatpush3.msra.mxu0 %v1702_v21  ;;  %2028 = vmatpush3.msra.mxu1 %v1301_v34 }
 0x1cd   : > { %1974 = vmatprep.subr.mxu0 %v1701_v22  ;;  %2029 = vmatprep.subr.mxu1 %v1300_v36 }
 0x1ce   : > { %1975 = vmatpush3.msra.mxu0 %v1701_v22  ;;  %2030 = vmatpush3.msra.mxu1 %v1300_v36 }
 0x1cf   : > { %1976 = vmatprep.subr.mxu0 %v1700_v23  ;;  %2031 = vmatprep.subr.mxu1 %v1299_v38 }
 0x1d0   : > { %1977 = vmatpush3.msra.mxu0 %v1700_v23  ;;  %2032 = vmatpush3.msra.mxu1 %v1299_v38 }
 0x1d1   : > { %1979 = vmatmul.mubr.msk.f32.vlgmr.msra.gmra.mxu0 %vm708_vm1, %v1093_v24  ;;  %2000 = vmatprep.subr.mxu0 %v1728_v25  ;;  %v1743_v24 = vld [vmem:[%s2470_s9] ss:$0 sm:$0xff] }
 0x1d2   : > { %2001 = vmatpush3.msra.mxu0 %v1728_v25  ;;  %2033 = vmatprep.subr.mxu1 %v1298_v40 }
 0x1d3   : > { %2002 = vmatprep.subr.mxu0 %v1727_v27  ;;  %2034 = vmatpush3.msra.mxu1 %v1298_v40 }
 0x1d4   : > { %2003 = vmatpush3.msra.mxu0 %v1727_v27 }
 0x1d5   : > { %2004 = vmatprep.subr.mxu0 %v1726_v29 }
 0x1d6   : > { %2005 = vmatpush3.msra.mxu0 %v1726_v29 }
 0x1d7   : > { %2006 = vmatprep.subr.mxu0 %v1725_v31 }
 0x1d8   : > { %2007 = vmatpush3.msra.mxu0 %v1725_v31 }
 0x1d9   : > { %2008 = vmatprep.subr.mxu0 %v1724_v33 }
 0x1da   : > { %2009 = vmatpush3.msra.mxu0 %v1724_v33 }
 0x1db   : > { %2010 = vmatprep.subr.mxu0 %v1723_v35 }
 0x1dc   : > { %2011 = vmatpush3.msra.mxu0 %v1723_v35 }
 0x1dd   : > { %2012 = vmatprep.subr.mxu0 %v1722_v37 }
 0x1de   : > { %2013 = vmatpush3.msra.mxu0 %v1722_v37 }
 0x1df   : > { %2014 = vmatprep.subr.mxu0 %v1721_v39 }
 0x1e0   : > { %2015 = vmatpush3.msra.mxu0 %v1721_v39 }
 0x1e1   : > { %2038 = vmatprep.subr.mxu0 %v1740_v41 }
 0x26f   : > { %v1904_v42 = vpop.f32.mrf.mxu0 }
 0x270   : > { %v901_v47 = vadd.f32 %v1923_v43, %v1904_v42  ;;  %v1961_v48 = vpop.f32.mrf.mxu1 }
 0x271   : > { %v814_v44 = vpop.f32.mrf.mxu0 }
 0x272   : > { %v896_v50 = vadd.f32 %v895_v45, %v814_v44  ;;  %v1081_v53 = vpop.f32.mrf.mxu1 }
 0x280   : > { %v1942_v46 = vpop.f32.mrf.mxu0 }
 0x281   : > { %v997_v51 = vadd.f32 %v1942_v46, %v901_v47  ;;  %v1999_v55 = vpop.f32.mrf.mxu1 }
 0x282   : > { %v987_v49 = vpop.f32.mrf.mxu0 }
 0x283   : > { %v996_v52 = vadd.f32 %v987_v49, %v896_v50  ;;  %v1091_v54 = vadd.f32 %v1961_v48, %v997_v51  ;;  %v1269_v63 = vpop.f32.mrf.mxu1 }
 0x285   : > { %v1090_v58 = vadd.f32 %v1081_v53, %v996_v52 }
 0x291   : > { %v1980_v56 = vpop.f32.mrf.mxu0 }
 0x292   : > { %v1185_v57 = vadd.f32 %v1980_v56, %v1091_v54 }
 0x293   : > { %v1175_v60 = vpop.f32.mrf.mxu0 }
 0x294   : > { %v1279_v61 = vadd.f32 %v1999_v55, %v1185_v57  ;;  %v1184_v62 = vadd.f32 %v1175_v60, %v1090_v58 }
 0x296   : > { %v1288_v0 = vadd.f32 %v1720_v59, %v1279_v61  ;;  %v1278_v1 = vadd.f32 %v1269_v63, %v1184_v62 }
 0x298   : > { %v1290_v2 = vmax.f32 %v1288_v0, 0.0  ;;  %v1287_v3 = vadd.f32 %v1720_v59, %v1278_v1 }
 0x29a   : > { %1295 = vst.msk [vmem:[#allocation4 + $0x9] sm:$0xff] %vm708_vm1, %v1290_v2  ;;  %v1289_v4 = vmax.f32 %v1287_v3, 0.0 }
 0x29c   : > { %1294 = vst.msk [vmem:[#allocation4 + $0x1] sm:$0xff] %vm708_vm1, %v1289_v4 }
 0x2a1   : > { %v1307_v8 = vld [vmem:[#allocation4 + $0x9] sm:$0xff] }
 0x2a2   : > { %v1480_v17 = vld [vmem:[#allocation4 + $0xa] sm:$0xff] }
 0x2a3   : > { %v1306_v5 = vld [vmem:[#allocation4 + $0x1] sm:$0xff] }
 0x2a4   : > { %v1296_v6 = vld [vmem:[#allocation4] sm:$0xff]  ;;  %v1297_v7 = vld [vmem:[#allocation4 + $0x8] sm:$0xff]  ;;  %2016 = vmatprep.mubr.msk.f32.mxu0 %vm708_vm1, %v1306_v5 }
 0x2a5   : > { %2035 = vmatprep.mubr.msk.f32.mxu1 %vm708_vm1, %v1296_v6  ;;  %2017 = vmatmul.mubr.msk.f32.vlgmr.msra.gmra.mxu0 %vm708_vm1, %v1307_v8  ;;  %v1479_v10 = vld [vmem:[#allocation4 + $0x2] sm:$0xff] }
 0x2a6   : > { %2036 = vmatmul.mubr.msk.f32.vlgmr.msra.gmra.mxu1 %vm708_vm1, %v1297_v7  ;;  %2039 = vmatpush3.msra.mxu0 %v1740_v41 }
 0x2a7   : > { %2054 = vmatprep.mubr.msk.f32.mxu0 %vm708_vm1, %v1479_v10  ;;  %2040 = vmatprep.subr.mxu0 %v1739_v9 }
 0x2a8   : > { %2041 = vmatpush3.msra.mxu0 %v1739_v9 }
 0x2a9   : > { %2042 = vmatprep.subr.mxu0 %v1738_v11 }
 0x2aa   : > { %2043 = vmatpush3.msra.mxu0 %v1738_v11 }
 0x2ab   : > { %2044 = vmatprep.subr.mxu0 %v1737_v12 }
 0x2ac   : > { %2045 = vmatpush3.msra.mxu0 %v1737_v12 }
 0x2ad   : > { %2046 = vmatprep.subr.mxu0 %v1736_v13 }
 0x2ae   : > { %2047 = vmatpush3.msra.mxu0 %v1736_v13 }
 0x2af   : > { %2048 = vmatprep.subr.mxu0 %v1735_v14 }
 0x2b0   : > { %2049 = vmatpush3.msra.mxu0 %v1735_v14 }
 0x2b1   : > { %2050 = vmatprep.subr.mxu0 %v1734_v15 }
 0x2b2   : > { %2051 = vmatpush3.msra.mxu0 %v1734_v15 }
 0x2b3   : > { %2052 = vmatprep.subr.mxu0 %v1733_v16 }
 0x2b4   : > { %2053 = vmatpush3.msra.mxu0 %v1733_v16 }
 0x2b5   : > { %2055 = vmatmul.mubr.msk.f32.vlgmr.msra.gmra.mxu0 %vm708_vm1, %v1480_v17 }
 0x365   : > { %v2018_v18 = vpop.f32.mrf.mxu0 }
 0x366   : > { %v2037_v19 = vpop.f32.mrf.mxu1 }
 0x367   : > { %v1389_v20 = vpop.f32.mrf.mxu0  ;;  %v1476_v22 = vadd.f32 %v2037_v19, %v2018_v18 }
 0x368   : > { %v1470_v21 = vpop.f32.mrf.mxu1 }
 0x369   : > { %v1471_v25 = vadd.f32 %v1470_v21, %v1389_v20 }
 0x375   : > { %v2056_v23 = vpop.f32.mrf.mxu0 }
 0x376   : > { %v1572_v26 = vadd.f32 %v2056_v23, %v1476_v22 }
 0x377   : > { %v1562_v27 = vpop.f32.mrf.mxu0 }
 0x378   : > { %v1581_v28 = vadd.f32 %v1743_v24, %v1572_v26  ;;  %v1571_v29 = vadd.f32 %v1562_v27, %v1471_v25 }
 0x37a   : > { %v1583_v30 = vmax.f32 %v1581_v28, 0.0  ;;  %v1580_v31 = vadd.f32 %v1743_v24, %v1571_v29 }
 0x37c   : > { %1585 = vst.msk [vmem:[%s376_s29 + $0x8] sm:$0xff] %vm708_vm1, %v1583_v30  ;;  %v1582_v32 = vmax.f32 %v1580_v31, 0.0 }
 0x37e   : > { %1584 = vst.msk [vmem:[%s376_s29] sm:$0xff] %vm708_vm1, %v1582_v32 }
 0x37f PF: > { %s20_s13 = sadd.s32 1, %s2073_s13  }
 0x380   : > { %p17_p4 = scmp.ge.s32.totalorder %s20_s13, 4  }
 0x382   :  { %19 = sbr.rel (!%p17_p4) target bundleno = 1 (0x1), region = 101 }

</bundles_post_ra>
